<compile_context>
chip_gen: v7x
topology: tpu7x:2x2x1
jax: 0.10.0
libtpu: 0.0.40
codegen_flags: <defaults>
</compile_context>

<pallas_src>
import functools

import numpy as np
import jax
import jax.numpy as jnp
from jax.experimental import pallas as pl
from jax.experimental.pallas import tpu as pltpu

_MIB = 1024 * 1024


# ----------------------------------------------------------------------------
# Kernels
# ----------------------------------------------------------------------------
def _ffn_resident_kernel(x_ref, w1_ref, b1_ref, w2_ref, b2_ref, o_ref):
    # x_ref: (tm, d_model) any dtype; w1_ref: (d_model, d_ff) bf16 (VMEM-resident)
    # b1_ref: (1, d_ff) f32; w2_ref: (d_ff, d_out) bf16 (VMEM-resident)
    # b2_ref: (1, d_out) f32; o_ref: (tm, d_out)
    x = x_ref[...].astype(w1_ref.dtype)  # in-kernel cast: no extra HBM pass over x
    h = jnp.dot(x, w1_ref[...], preferred_element_type=jnp.float32)
    h = jnp.maximum(h + b1_ref[...], 0.0)  # bias + ReLU in f32
    # TODO(synk): dropout is identity here (eval mode); training-mode dropout would
    # mask `h` using pltpu.prng_seed / pltpu.prng_random_bits.
    y = jnp.dot(h.astype(w2_ref.dtype), w2_ref[...],
                preferred_element_type=jnp.float32)
    o_ref[...] = (y + b2_ref[...]).astype(o_ref.dtype)


def _ffn_streaming_kernel(x_ref, w1_ref, b1_ref, w2_ref, b2_ref, o_ref, acc_ref):
    # Grid: (row tiles [parallel], d_ff tiles [arbitrary/reduction]).
    # Per-d_ff-tile bias+ReLU is exact because matmul1 contracts the full d_model.
    j = pl.program_id(1)

    @pl.when(j == 0)
    def _():
        acc_ref[...] = jnp.zeros_like(acc_ref)

    x = x_ref[...].astype(w1_ref.dtype)
    h = jnp.dot(x, w1_ref[...], preferred_element_type=jnp.float32)
    h = jnp.maximum(h + b1_ref[...], 0.0)
    acc_ref[...] += jnp.dot(h.astype(w2_ref.dtype), w2_ref[...],
                            preferred_element_type=jnp.float32)

    @pl.when(j == pl.num_programs(1) - 1)
    def _():
        o_ref[...] = (acc_ref[...] + b2_ref[...]).astype(o_ref.dtype)


# ----------------------------------------------------------------------------
# pallas_call wrapper (jitted; tile sizes / path are static)
# ----------------------------------------------------------------------------
@functools.partial(
    jax.jit,
    static_argnames=("tm", "tf", "resident", "vmem_limit", "out_dtype"))
def _ffn_impl(x, w1, b1, w2, b2, *, tm, tf, resident, vmem_limit, out_dtype):
    d_model = x.shape[-1]
    d_ff = w1.shape[1]
    d_out = w2.shape[1]
    lead_shape = x.shape[:-1]

    x2d = x.reshape(-1, d_model)
    n = x2d.shape[0]
    b1r = b1.reshape(1, d_ff).astype(jnp.float32)
    b2r = b2.reshape(1, d_out).astype(jnp.float32)

    flops = 2 * n * d_ff * (d_model + d_out)
    bytes_accessed = int(
        x2d.size * x2d.dtype.itemsize
        + w1.size * w1.dtype.itemsize
        + w2.size * w2.dtype.itemsize
        + b1r.size * 4 + b2r.size * 4
        + n * d_out * np.dtype(out_dtype).itemsize)
    cost = pl.CostEstimate(flops=flops, transcendentals=0,
                           bytes_accessed=bytes_accessed)

    if resident:
        # Weights VMEM-resident: grid-invariant index maps -> DMA'd from HBM once.
        out = pl.pallas_call(
            _ffn_resident_kernel,
            out_shape=jax.ShapeDtypeStruct((n, d_out), out_dtype),
            grid_spec=pltpu.PrefetchScalarGridSpec(
                num_scalar_prefetch=0,
                grid=(pl.cdiv(n, tm),),
                in_specs=[
                    pl.BlockSpec((tm, d_model), lambda i: (i, 0)),      # x rows
                    pl.BlockSpec((d_model, d_ff), lambda i: (0, 0)),    # w1 (resident)
                    pl.BlockSpec((1, d_ff), lambda i: (0, 0)),          # b1
                    pl.BlockSpec((d_ff, d_out), lambda i: (0, 0)),      # w2 (resident)
                    pl.BlockSpec((1, d_out), lambda i: (0, 0)),         # b2
                ],
                out_specs=pl.BlockSpec((tm, d_out), lambda i: (i, 0)),
            ),
            compiler_params=pltpu.CompilerParams(
                dimension_semantics=("parallel",),
                vmem_limit_bytes=vmem_limit,
            ),
            cost_estimate=cost,
        )(x2d, w1, b1r, w2, b2r)
    else:
        # Stream weight slices over a trailing reduction axis; f32 VMEM accumulator.
        out = pl.pallas_call(
            _ffn_streaming_kernel,
            out_shape=jax.ShapeDtypeStruct((n, d_out), out_dtype),
            grid_spec=pltpu.PrefetchScalarGridSpec(
                num_scalar_prefetch=0,
                grid=(pl.cdiv(n, tm), d_ff // tf),
                in_specs=[
                    pl.BlockSpec((tm, d_model), lambda i, j: (i, 0)),   # x rows
                    pl.BlockSpec((d_model, tf), lambda i, j: (0, j)),   # w1 slice
                    pl.BlockSpec((1, tf), lambda i, j: (0, j)),         # b1 slice
                    pl.BlockSpec((tf, d_out), lambda i, j: (j, 0)),     # w2 slice
                    pl.BlockSpec((1, d_out), lambda i, j: (0, 0)),      # b2
                ],
                out_specs=pl.BlockSpec((tm, d_out), lambda i, j: (i, 0)),
                scratch_shapes=[pltpu.VMEM((tm, d_out), jnp.float32)],
            ),
            compiler_params=pltpu.CompilerParams(
                dimension_semantics=("parallel", "arbitrary"),
                vmem_limit_bytes=vmem_limit,
            ),
            cost_estimate=cost,
        )(x2d, w1, b1r, w2, b2r)

    return out.reshape(*lead_shape, d_out)


# ----------------------------------------------------------------------------
# Per-generation tile / VMEM selection (pure Python, outside jit)
# ----------------------------------------------------------------------------
def _round_up(x, m):
    return ((x + m - 1) // m) * m


def _vmem_capacity_bytes():
    try:
        return int(pltpu.get_tpu_info().vmem_capacity_bytes)
    except Exception:
        return 64 * _MIB  # conservative (v7x-sized) fallback


def _pick_ff_tile(d_ff, tf_target):
    """Largest divisor of d_ff that is a multiple of 256 (then 128) and <= tf_target."""
    if d_ff <= tf_target:
        return d_ff
    for mult in (256, 128):
        cand = (tf_target // mult) * mult
        while cand >= mult:
            if d_ff % cand == 0:
                return cand
            cand -= mult
    # TODO(synk): pathological d_ff with no 128-multiple divisor; whole-d_ff fallback is
    # correct but may exceed VMEM for huge d_ff (would need a masked partial tile).
    return d_ff


def _resident_bytes(tm, d_model, d_ff, d_out, xbytes, wbytes, obytes):
    return (2 * (d_model * d_ff + d_ff * d_out) * wbytes    # weights (count double-buffered)
            + 2 * (d_ff + d_out) * 4                        # biases
            + 2 * tm * (d_model * xbytes + d_out * obytes)  # x / out blocks (double-buffered)
            + tm * d_ff * (4 + wbytes)                      # h f32 + bf16 cast copy
            + tm * d_out * 4)                               # y f32


def _streaming_bytes(tm, tf, d_model, d_out, xbytes, wbytes, obytes):
    return (2 * tm * d_model * xbytes
            + 2 * (d_model * tf + tf * d_out) * wbytes
            + 2 * (tf + d_out) * 4
            + 2 * tm * d_out * obytes
            + tm * d_out * 4                                # f32 accumulator scratch
            + tm * tf * (4 + wbytes))                       # h f32 + bf16 cast copy


def positionwise_ffn(x, w1, b1, w2, b2, *, out_dtype=None):
    """x: (..., d_model) -> (..., d_out); y = relu(x@w1 + b1) @ w2 + b2.

    Store w1/w2 persistently in bf16 for best performance (no per-call cast pass).
    """
    d_model = x.shape[-1]
    d_ff = w1.shape[1]
    d_out = w2.shape[1]
    n = 1
    for s in x.shape[:-1]:
        n *= s
    if out_dtype is None:
        out_dtype = x.dtype

    xbytes = np.dtype(x.dtype).itemsize
    wbytes = np.dtype(w1.dtype).itemsize
    obytes = np.dtype(out_dtype).itemsize

    vmem_cap = _vmem_capacity_bytes()
    # ~80% of physical VMEM, capped at 100 MiB: headroom for Mosaic internal scratch
    # on v7x (64 MiB phys) while allowing big tiles on v5e/v6e (128 MiB phys).
    vmem_limit = min(int(vmem_cap * 0.8), 100 * _MIB)
    two_core = vmem_cap <= 64 * _MIB  # v7x-class: 2 TensorCores share the chip

    # Row tile: MXU/roofline-sized, shrunk to n for small inputs.
    tm_target = 512
    tm = min(tm_target, n) if n > 0 else 1
    # v7x: keep >= 2 row tiles so the "parallel" axis is sharded across both TCs.
    if two_core and n > 256 and (n + tm - 1) // tm < 2:
        tm = max(256, _round_up((n + 1) // 2, 8))

    resident = _resident_bytes(tm, d_model, d_ff, d_out, xbytes, wbytes,
                               obytes) <= int(vmem_limit * 0.85)
    if resident:
        tf = d_ff  # unused on this path
    else:
        tf = _pick_ff_tile(d_ff, tf_target=512)
        # Shrink tm (never tile d_out) until the streaming working set fits.
        while tm > 8 and _streaming_bytes(tm, tf, d_model, d_out, xbytes, wbytes,
                                          obytes) > int(vmem_limit * 0.85):
            tm = _round_up(tm // 2, 8)

    return _ffn_impl(x, w1, b1, w2, b2, tm=tm, tf=tf, resident=resident,
                     vmem_limit=vmem_limit, out_dtype=out_dtype)


# ----------------------------------------------------------------------------
# Params init (mirrors torch nn.Linear default uniform +-1/sqrt(fan_in))
# ----------------------------------------------------------------------------
def init_ffn_params(key, d_model, d_ff, d_out=-1, dtype=jnp.float32):
    if d_out < 0:
        d_out = d_model
    k1, k2, k3, k4 = jax.random.split(key, 4)
    bound1 = 1.0 / (d_model ** 0.5)
    bound2 = 1.0 / (d_ff ** 0.5)
    # Stored transposed vs torch: w1 is (d_model, d_ff) == torch_w1.T
    w1 = jax.random.uniform(k1, (d_model, d_ff), dtype, -bound1, bound1)
    b1 = jax.random.uniform(k2, (1, d_ff), dtype, -bound1, bound1)
    w2 = jax.random.uniform(k3, (d_ff, d_out), dtype, -bound2, bound2)
    b2 = jax.random.uniform(k4, (1, d_out), dtype, -bound2, bound2)
    return w1, b1, w2, b2


if __name__ == "__main__":
    key = jax.random.PRNGKey(0)
    k_x, k_p = jax.random.split(key)

    batch, seq, d_model, d_ff = 2, 8, 32, 64
    x = jax.random.normal(k_x, (batch, seq, d_model), dtype=jnp.float32)
    w1_f32, b1, w2_f32, b2 = init_ffn_params(k_p, d_model, d_ff)
    # One-time persistent bf16 weight storage (no per-call cast pass over HBM).
    w1 = w1_f32.astype(jnp.bfloat16)
    w2 = w2_f32.astype(jnp.bfloat16)

    # Path 1: auto-selected (VMEM-resident weights at these shapes).
    y = positionwise_ffn(x, w1, b1, w2, b2)
    y = jax.block_until_ready(y)

    # Path 2: exercise the streaming (d_ff-tiled, f32-accumulator) kernel too.
    y_stream = _ffn_impl(x, w1, b1, w2, b2, tm=16, tf=d_ff, resident=False,
                         vmem_limit=48 * _MIB, out_dtype=x.dtype)
    y_stream = jax.block_until_ready(y_stream)

    # Reference: same bf16-operand / f32-accumulate math, dropout = identity.
    x2d = x.reshape(-1, d_model).astype(jnp.bfloat16)
    h = jnp.dot(x2d, w1, preferred_element_type=jnp.float32)
    h = jnp.maximum(h + b1, 0.0)
    ref = jnp.dot(h.astype(jnp.bfloat16), w2, preferred_element_type=jnp.float32) + b2
    ref = ref.reshape(batch, seq, -1).astype(x.dtype)

    assert y.shape == (batch, seq, d_model)
    assert jnp.allclose(y, ref, atol=2e-2, rtol=2e-2), float(jnp.max(jnp.abs(y - ref)))
    assert jnp.allclose(y_stream, ref, atol=2e-2, rtol=2e-2), \
        float(jnp.max(jnp.abs(y_stream - ref)))

    print("KERNEL_OK")
</pallas_src>

<mosaic_0001>
module attributes {stable_mosaic.version = 11 : i64} {
  func.func @_ffn_resident_kernel(%arg0: i32, %arg1: memref<16x32xf32, #tpu.memory_space<vmem>>, %arg2: memref<32x64xbf16, #tpu.memory_space<vmem>>, %arg3: memref<1x64xf32, #tpu.memory_space<vmem>>, %arg4: memref<64x32xbf16, #tpu.memory_space<vmem>>, %arg5: memref<1x32xf32, #tpu.memory_space<vmem>>, %arg6: memref<16x32xf32, #tpu.memory_space<vmem>>) attributes {dimension_semantics = [#tpu.dimension_semantics<parallel>], iteration_bounds = array<i64: 1>, scalar_prefetch = 0 : i64, scratch_operands = 0 : i64, tpu.core_type = #tpu.core_type<tc>, window_params = [{transform_indices = @transform_0, window_bounds = array<i64: 16, 32>}, {pipeline_mode = #tpu.pipeline_mode<synchronous>, transform_indices = @transform_1, window_bounds = array<i64: 32, 64>}, {pipeline_mode = #tpu.pipeline_mode<synchronous>, transform_indices = @transform_2, window_bounds = array<i64: 1, 64>}, {pipeline_mode = #tpu.pipeline_mode<synchronous>, transform_indices = @transform_3, window_bounds = array<i64: 64, 32>}, {pipeline_mode = #tpu.pipeline_mode<synchronous>, transform_indices = @transform_4, window_bounds = array<i64: 1, 32>}, {transform_indices = @transform_5, window_bounds = array<i64: 16, 32>}]} {
    %c0 = arith.constant 0 : index
    %c0_0 = arith.constant 0 : index
    %0 = vector.load %arg1[%c0, %c0_0] : memref<16x32xf32, #tpu.memory_space<vmem>>, vector<16x32xf32>
    %1 = arith.truncf %0 : vector<16x32xf32> to vector<16x32xbf16>
    %c0_1 = arith.constant 0 : index
    %c0_2 = arith.constant 0 : index
    %2 = vector.load %arg2[%c0_1, %c0_2] : memref<32x64xbf16, #tpu.memory_space<vmem>>, vector<32x64xbf16>
    %cst = arith.constant dense<0.000000e+00> : vector<16x64xf32>
    %3 = tpu.matmul %1, %2, %cst {dimension_numbers = #tpu.dot_dimension_numbers<[1], [0], [0], [1], [0, 0, 1, 1], [], []>} : vector<16x32xbf16>, vector<32x64xbf16>, vector<16x64xf32> -> vector<16x64xf32>
    %c0_3 = arith.constant 0 : index
    %c0_4 = arith.constant 0 : index
    %4 = vector.load %arg3[%c0_3, %c0_4] : memref<1x64xf32, #tpu.memory_space<vmem>>, vector<1x64xf32>
    %5 = vector.broadcast %4 : vector<1x64xf32> to vector<16x64xf32>
    %6 = arith.addf %3, %5 : vector<16x64xf32>
    %cst_5 = arith.constant 0.000000e+00 : f32
    %7 = vector.broadcast %cst_5 : f32 to vector<16x64xf32>
    %8 = arith.maximumf %6, %7 : vector<16x64xf32>
    %9 = arith.truncf %8 : vector<16x64xf32> to vector<16x64xbf16>
    %c0_6 = arith.constant 0 : index
    %c0_7 = arith.constant 0 : index
    %10 = vector.load %arg4[%c0_6, %c0_7] : memref<64x32xbf16, #tpu.memory_space<vmem>>, vector<64x32xbf16>
    %cst_8 = arith.constant dense<0.000000e+00> : vector<16x32xf32>
    %11 = tpu.matmul %9, %10, %cst_8 {dimension_numbers = #tpu.dot_dimension_numbers<[1], [0], [0], [1], [0, 0, 1, 1], [], []>} : vector<16x64xbf16>, vector<64x32xbf16>, vector<16x32xf32> -> vector<16x32xf32>
    %c0_9 = arith.constant 0 : index
    %c0_10 = arith.constant 0 : index
    %12 = vector.load %arg5[%c0_9, %c0_10] : memref<1x32xf32, #tpu.memory_space<vmem>>, vector<1x32xf32>
    %13 = vector.broadcast %12 : vector<1x32xf32> to vector<16x32xf32>
    %14 = arith.addf %11, %13 : vector<16x32xf32>
    %c0_11 = arith.constant 0 : index
    %c0_12 = arith.constant 0 : index
    %15 = vector.load %arg6[%c0_11, %c0_12] : memref<16x32xf32, #tpu.memory_space<vmem>>, vector<16x32xf32>
    tpu.vector_store %arg6[%c0_11, %c0_12], %14 {strides = array<i32>} : memref<16x32xf32, #tpu.memory_space<vmem>>, vector<16x32xf32>,
    return
  }
  func.func @transform_0(%arg0: i32) -> (i32, i32) {
    %c0_i32 = arith.constant 0 : i32
    %c0_i32_0 = arith.constant 0 : i32
    return %arg0, %c0_i32 : i32, i32
  }
  func.func @transform_1(%arg0: i32) -> (i32, i32) {
    %c0_i32 = arith.constant 0 : i32
    %c0_i32_0 = arith.constant 0 : i32
    %c0_i32_1 = arith.constant 0 : i32
    return %c0_i32, %c0_i32_0 : i32, i32
  }
  func.func @transform_2(%arg0: i32) -> (i32, i32) {
    %c0_i32 = arith.constant 0 : i32
    %c0_i32_0 = arith.constant 0 : i32
    %c0_i32_1 = arith.constant 0 : i32
    return %c0_i32, %c0_i32_0 : i32, i32
  }
  func.func @transform_3(%arg0: i32) -> (i32, i32) {
    %c0_i32 = arith.constant 0 : i32
    %c0_i32_0 = arith.constant 0 : i32
    %c0_i32_1 = arith.constant 0 : i32
    return %c0_i32, %c0_i32_0 : i32, i32
  }
  func.func @transform_4(%arg0: i32) -> (i32, i32) {
    %c0_i32 = arith.constant 0 : i32
    %c0_i32_0 = arith.constant 0 : i32
    %c0_i32_1 = arith.constant 0 : i32
    return %c0_i32, %c0_i32_0 : i32, i32
  }
  func.func @transform_5(%arg0: i32) -> (i32, i32) {
    %c0_i32 = arith.constant 0 : i32
    %c0_i32_0 = arith.constant 0 : i32
    return %arg0, %c0_i32 : i32, i32
  }
}

</mosaic_0001>

<bundles_post_ra>
// kernel: _ffn_impl.1
= control target key start
LH: loop header
LB: loop body
LE: loop exit
PB: predicated region body
PF: predicated region fallthrough
CT: control target
= control target key end

     0   :  { %v271_v1 = vmov 0.0   ;;  %vm272_vm0 = vmmov 0   ;;  %vm48_vm1 = vcmask 261120   ;;  %s351_s0 = inlined_call_operand.vmem [shape: f32[16,32], index: 0, kind: input, shape index: {}]   ;;  %s352_s1 = inlined_call_operand.vmem [shape: bf16[32,64], index: 1, kind: input, shape index: {}]   ;;  %s353_s2 = inlined_call_operand.vmem [shape: f32[1,64], index: 2, kind: input, shape index: {}]   ;;  %s354_s3 = inlined_call_operand.vmem [shape: bf16[64,32], index: 3, kind: input, shape index: {}]   ;;  %s355_s4 = inlined_call_operand.vmem [shape: f32[1,32], index: 4, kind: input, shape index: {}]   ;;  %s356_s5 = inlined_call_operand.hbm [shape: f32[16,32], index: 5, kind: output, shape index: {}]  }
   0x1   :  { %v241_v0 = vld [vmem:[%s352_s1] sm:$0xff]   ;;  %216 = vmatprep.subr.bf16.mxu0 %v271_v1  ;;  %v242_v2 = vld [vmem:[%s352_s1 + $0x8] sm:$0xff]   ;;  %224 = vmatprep.subr.bf16.mxu1 %v271_v1 }
   0x2   :  { %217 = vmatpush3.bf16.msra.mxu0 %v241_v0  ;;  %220 = vmatprep.mubr.msk.bf16.mxu0 %vm272_vm0, %v271_v1  ;;  %v22_v3 = vld [vmem:[%s351_s0] sm:$0xff]  ;;  %v23_v4 = vld [vmem:[%s351_s0 + $0x8] sm:$0xff] }
   0x3   :  { %218 = vmatprep.subr.bf16.mxu0 %v271_v1  ;;  %v243_v5 = vld [vmem:[%s354_s3] sm:$0xff]   ;;  %232 = vmatprep.mubr.msk.bf16.mxu1 %vm272_vm0, %v271_v1  ;;  %v244_v6 = vld [vmem:[%s354_s3 + $0x8] sm:$0xff]   ;;  %v24_v7 = vpack.c.bf16 %v23_v4, %v22_v3 }
   0x4   :  { %225 = vmatpush3.bf16.msra.mxu1 %v243_v5 }
   0x5   :  { %226 = vmatprep.subr.bf16.mxu1 %v271_v1 }
   0x6   :  { %219 = vmatpush3.bf16.msra.mxu0 %v242_v2 }
   0x7   :  { %10 = vsyncpa [#allocation3], 0  ;;  %v245_v8 = vld [vmem:[%s354_s3 + $0x10] sm:$0xff]   ;;  %v246_v9 = vld [vmem:[%s354_s3 + $0x18] sm:$0xff]   ;;  %vm135_vm2 = vcmask 523264   ;;  %s273_s3 = smov [#allocation2]  }
   0x8   :  { %227 = vmatpush3.bf16.msra.mxu1 %v244_v6  ;;  %v198_v10 = vld [vmem:[%s353_s2] ss:$0 sm:$0xff]  ;;  %s187_s11 = sshll.u32 %s273_s3, 4  ;;  %s188_s11 = int_to_ptr.vmem [resolvable:$true] %s187_s11 }
   0x9   :  { %221 = vmatmul.mubr.msk.bf16.vlgmr.msra.gmra.mrb[0].mxu0 %vm48_vm1, %v24_v7  ;;  %228 = vmatprep.subr.bf16.mxu1 %v271_v1  ;;  %v202_v20 = vld [vmem:[%s355_s4] ss:$0 sm:$0xff]  ;;  %s247_s2 = scalar_lea.vmem %s188_s11, 256  ;;  %p252_p1 = scmp.lt.s32.totalorder %s188_s11, %s188_s11 }
   0xa   :  { %p248_p0 = scmp.ne.s32.totalorder %s188_s11, %s247_s2  ;;  %p253_p2 = scmp.lt.s32.totalorder %s247_s2, %s247_s2 }
   0xc   :  { %229 = vmatpush3.bf16.msra.mxu1 %v245_v8  ;;  %p254_p3 = por %p253_p2, %p252_p1 }
   0xd   :  { %230 = vmatprep.subr.bf16.mxu1 %v271_v1 }
   0xe   :  { %p255_p4 = pnand %p254_p3, %p248_p0 }
  0x10   :  { %231 = vmatpush3.bf16.msra.mxu1 %v246_v9 }
  0xdc   :  { %v86_v11 = vpop.f32.mrb[0].mxu0 }
  0xdd   :  { %v87_v12 = vadd.f32 %v198_v10, %v86_v11  ;;  %v222_v13 = vpop.f32.mrb[1].mxu0 }
  0xde   :  { %v89_v14 = vpop.f32.mrb[2].mxu0 }
  0xdf   :  { %v90_v15 = vadd.f32 %v198_v10, %v89_v14  ;;  %v223_v16 = vpop.f32.mrb[3].mxu0  ;;  %v93_v17 = vmax.f32 %v87_v12, 0.0 }
  0xe1   :  { %v94_v18 = vmax.f32 %v90_v15, 0.0 }
  0xe3   :  { %v95_v19 = vpack.c.bf16 %v94_v18, %v93_v17 }
  0xe5   :  { %233 = vmatmul.mubr.msk.bf16.vlgmr.msra.gmra.mrb[0].mxu1 %vm135_vm2, %v95_v19 }
 0x1b8   :  { %v173_v21 = vpop.f32.mrb[0].mxu1 }
 0x1b9   :  { %v174_v22 = vadd.f32 %v202_v20, %v173_v21  ;;  %v234_v23 = vpop.f32.mrb[1].mxu1 }
 0x1ba   :  { %v176_v24 = vpop.f32.mrb[2].mxu1 }
 0x1bb   :  { %180 = vst.msk [vmem:[#allocation2] sm:$0xff] %vm48_vm1, %v174_v22  ;;  %v177_v25 = vadd.f32 %v202_v20, %v176_v24  ;;  %v235_v26 = vpop.f32.mrb[3].mxu1 }
 0x1bd   :  { %181 = vst.msk [vmem:[#allocation2 + $0x8] sm:$0xff] %vm48_vm1, %v177_v25 }
 0x1be   :  { %258 = shalt.err (!%p255_p4)
}
 0x1bf   :  { %s259_s13 = scalar_lea.hbm %s356_s5, 256 }
 0x1c0   :  { %p260_p5 = scmp.ne.s32.totalorder %s356_s5, %s259_s13  ;;  %p263_p6 = scmp.lt.u32.totalorder %s259_s13, %s356_s5 }
 0x1c2   :  { %p265_p7 = pnand %p263_p6, %p260_p5 }
 0x1c4   :  { %268 = shalt.err (!%p265_p7)
}
 0x1c5   :  { %s274_s18 = smov 128   ;;  %s275_s19 = smov 8  }
 0x1c6   :  { %193 = dma.vmem_to_hbm [thread:$0]  %s188_s11, 256, %s356_s5, [#allocation3], %s274_s18, %s274_s18, %s275_s19  }
 0x1c7   :  { %269 = dma.done.wait [#allocation3], 256  }
 0x1c8   :  { %270 = vsyncadd [#allocation3], 4294967040 }
 0x1c9   :  { %197 = vsyncpa [#allocation3], 1 }

</bundles_post_ra>
